<compile_context>
chip_gen: v7x
topology: tpu7x:2x2x1
jax: 0.10.0
libtpu: 0.0.40
codegen_flags: <defaults>
</compile_context>

<pallas_src>
import jax
import jax.numpy as jnp
from jax.experimental import pallas as pl
from jax.experimental.pallas import tpu as pltpu

EPS = 1e-5  # PyTorch InstanceNorm2d default eps.
_MIB = 1024 * 1024


def _vmem_capacity_bytes():
    """Per-core VMEM capacity; conservative fallback (v7x = 64 MiB/TC)."""
    try:
        return int(pltpu.get_tpu_info().vmem_capacity_bytes)
    except Exception:
        return 64 * _MIB


def _resident_bytes(tc, hw_lanes, itemsize):
    """Estimated VMEM bytes resident per grid step (double-buffered specs)."""
    x_block = tc * hw_lanes * itemsize       # one (TC, HW) block (in or out)
    stats_block = tc * 128 * 4               # (TC, 2) is lane-padded to 128, f32
    f32_tmp = tc * hw_lanes * 4              # f32 working copy / temporaries
    return 2 * (2 * x_block + stats_block) + f32_tmp


def _pick_channel_tile(N, C, HW, itemsize):
    """Channel tile: sublane-aligned (multiple of 8, or full C when C<=8),
    VMEM-bounded, with enough grid steps for pipelining / megacore balance."""
    hw_lanes = ((HW + 127) // 128) * 128
    capacity = _vmem_capacity_bytes()
    budget = min(24 * _MIB, capacity // 2)

    if C <= 8:
        tc = C                               # full channel dim is a legal block
    else:
        tc = 8
        for cand in (1024, 512, 256, 128, 64, 32, 16, 8):
            if cand <= C and _resident_bytes(cand, hw_lanes, itemsize) <= budget:
                tc = cand
                break
        # Keep >= ~8 grid steps so the pipeline can prefetch/write back around
        # compute and both v7x TensorCores get balanced work.
        while tc > 8 and N * pl.cdiv(C, tc) < 8:
            tc //= 2

    resident = _resident_bytes(tc, hw_lanes, itemsize)
    vmem_limit = int(min(capacity, max(32 * _MIB, resident + 8 * _MIB)))
    # TODO(synk): for C<=8 with extremely large H*W a single (C, HW) block can
    # still exceed VMEM; splitting the spatial axis would need a 2-pass reduce.
    return tc, vmem_limit


def _make_adain_kernel(hw):
    inv_hw = 1.0 / float(hw)

    def kernel(x_ref, stats_ref, o_ref):
        # x_ref: (TC, HW); stats_ref: (TC, 2) with [:,0]=mu, [:,1]=sigma.
        x = x_ref[...].astype(jnp.float32)

        # Two-pass biased mean/var (matches PyTorch InstanceNorm2d). The block
        # spans the full un-padded HW, so no lane mask / correction is needed.
        mean = jnp.sum(x, axis=-1, keepdims=True) * inv_hw
        diff = x - mean
        var = jnp.sum(diff * diff, axis=-1, keepdims=True) * inv_hw

        inv = jax.lax.rsqrt(var + EPS)
        mu = stats_ref[:, 0:1].astype(jnp.float32)
        sigma = stats_ref[:, 1:2].astype(jnp.float32)

        # Fused normalize + style affine: one mul + add over the full tile.
        scale = sigma * inv
        shift = mu - mean * scale
        o_ref[...] = (x * scale + shift).astype(o_ref.dtype)

    return kernel


def adaptive_instance_norm_2d(x, style_code, weight, bias):
    """x: (N, C, H, W); style_code: (N, S); weight: (2C, S); bias: (2C,)."""
    N, C, H, W = x.shape
    assert style_code.shape[0] == N
    assert weight.shape[0] == 2 * C
    HW = H * W

    # Tiny style MLP (the nn.Linear) stays in plain JAX — far below one MXU tile.
    stats = (style_code.astype(jnp.float32) @ weight.T.astype(jnp.float32)
             + bias.astype(jnp.float32))                 # (N, 2C)
    mu = stats[:, :C]
    sigma = stats[:, C:]
    stats3 = jnp.stack([mu, sigma], axis=-1)             # (N, C, 2)

    # Contiguous (free) reshape only — no pad / slice HBM round-trips. The
    # block's last dim is the full HW so the ragged lane group is handled by
    # masked loads/stores inside the kernel.
    x3 = x.reshape(N, C, HW)

    TC, vmem_limit = _pick_channel_tile(N, C, HW, jnp.dtype(x.dtype).itemsize)
    grid = (N, pl.cdiv(C, TC))

    out = pl.pallas_call(
        _make_adain_kernel(HW),
        out_shape=jax.ShapeDtypeStruct((N, C, HW), x.dtype),
        grid=grid,
        in_specs=[
            pl.BlockSpec((None, TC, HW), lambda n, c: (n, c, 0)),
            pl.BlockSpec((None, TC, 2), lambda n, c: (n, c, 0)),
        ],
        out_specs=pl.BlockSpec((None, TC, HW), lambda n, c: (n, c, 0)),
        compiler_params=pltpu.CompilerParams(
            dimension_semantics=("parallel", "parallel"),
            vmem_limit_bytes=vmem_limit),
    )(x3, stats3)

    return out.reshape(N, C, H, W)


def _reference(x, style_code, weight, bias):
    N, C, H, W = x.shape
    mean = x.mean(axis=(2, 3), keepdims=True)
    var = x.var(axis=(2, 3), keepdims=True)  # biased
    x_hat = (x - mean) / jnp.sqrt(var + EPS)
    stats = style_code @ weight.T + bias
    mu = stats[:, :C][:, :, None, None]
    sigma = stats[:, C:][:, :, None, None]
    return x_hat * sigma + mu


if __name__ == "__main__":
    N, C, S = 2, 4, 8

    key = jax.random.PRNGKey(0)
    kx, ks, kw, kb, kx2 = jax.random.split(key, 5)

    bound = 1.0 / jnp.sqrt(S)
    style_code = jax.random.normal(ks, (N, S), dtype=jnp.float32)
    weight = jax.random.uniform(kw, (2 * C, S), minval=-bound, maxval=bound,
                                dtype=jnp.float32)
    bias = jax.random.uniform(kb, (2 * C,), minval=-bound, maxval=bound,
                              dtype=jnp.float32)

    # Case 1: lane-aligned spatial size (16x16 -> HW=256).
    x = jax.random.normal(kx, (N, C, 16, 16), dtype=jnp.float32)
    out = jax.block_until_ready(adaptive_instance_norm_2d(x, style_code, weight, bias))
    ref = _reference(x, style_code, weight, bias)
    assert out.shape == x.shape
    assert jnp.allclose(out, ref, atol=1e-4, rtol=1e-4)

    # Case 2: non-128-multiple spatial size (14x14 -> HW=196): full-HW block,
    # masked ragged lane group, no pad/slice round-trips.
    x2 = jax.random.normal(kx2, (N, C, 14, 14), dtype=jnp.float32)
    out2 = jax.block_until_ready(adaptive_instance_norm_2d(x2, style_code, weight, bias))
    ref2 = _reference(x2, style_code, weight, bias)
    assert out2.shape == x2.shape
    assert jnp.allclose(out2, ref2, atol=1e-4, rtol=1e-4)

    print("KERNEL_OK")
</pallas_src>

<mosaic_0001>
module attributes {stable_mosaic.version = 11 : i64} {
  func.func @kernel(%arg0: i32, %arg1: i32, %arg2: memref<1x4x256xf32, #tpu.memory_space<vmem>>, %arg3: memref<1x4x2xf32, #tpu.memory_space<vmem>>, %arg4: memref<1x4x256xf32, #tpu.memory_space<vmem>>) attributes {dimension_semantics = [#tpu.dimension_semantics<parallel>, #tpu.dimension_semantics<parallel>], iteration_bounds = array<i64: 2, 1>, scalar_prefetch = 0 : i64, scratch_operands = 0 : i64, tpu.core_type = #tpu.core_type<tc>, window_params = [{transform_indices = @transform_0, window_bounds = array<i64: 1, 4, 256>}, {transform_indices = @transform_1, window_bounds = array<i64: 1, 4, 2>}, {transform_indices = @transform_2, window_bounds = array<i64: 1, 4, 256>}]} {
    %c0 = arith.constant 0 : index
    %c0_0 = arith.constant 0 : index
    %c0_1 = arith.constant 0 : index
    %0 = vector.load %arg2[%c0, %c0_0, %c0_1] : memref<1x4x256xf32, #tpu.memory_space<vmem>>, vector<1x4x256xf32>
    %1 = vector.shape_cast %0 : vector<1x4x256xf32> to vector<4x256xf32>
    %cst = arith.constant dense<0.000000e+00> : vector<4xf32>
    %2 = vector.multi_reduction <add>, %1, %cst [1] : vector<4x256xf32> to vector<4xf32>
    %3 = vector.shape_cast %2 : vector<4xf32> to vector<4x1xf32>
    %cst_2 = arith.constant 3.906250e-03 : f32
    %4 = vector.broadcast %cst_2 : f32 to vector<4x1xf32>
    %5 = arith.mulf %3, %4 : vector<4x1xf32>
    %6 = vector.broadcast %5 : vector<4x1xf32> to vector<4x256xf32>
    %7 = arith.subf %1, %6 : vector<4x256xf32>
    %8 = arith.mulf %7, %7 : vector<4x256xf32>
    %cst_3 = arith.constant dense<0.000000e+00> : vector<4xf32>
    %9 = vector.multi_reduction <add>, %8, %cst_3 [1] : vector<4x256xf32> to vector<4xf32>
    %10 = vector.shape_cast %9 : vector<4xf32> to vector<4x1xf32>
    %cst_4 = arith.constant 3.906250e-03 : f32
    %11 = vector.broadcast %cst_4 : f32 to vector<4x1xf32>
    %12 = arith.mulf %10, %11 : vector<4x1xf32>
    %cst_5 = arith.constant 9.99999974E-6 : f32
    %13 = vector.broadcast %cst_5 : f32 to vector<4x1xf32>
    %14 = arith.addf %12, %13 : vector<4x1xf32>
    %15 = math.rsqrt %14 : vector<4x1xf32>
    %c0_6 = arith.constant 0 : index
    %c0_7 = arith.constant 0 : index
    %c0_8 = arith.constant 0 : index
    %16 = vector.load %arg3[%c0_6, %c0_7, %c0_8] : memref<1x4x2xf32, #tpu.memory_space<vmem>>, vector<1x4x1xf32>
    %17 = vector.shape_cast %16 : vector<1x4x1xf32> to vector<4x1xf32>
    %c0_9 = arith.constant 0 : index
    %c0_10 = arith.constant 0 : index
    %c1 = arith.constant 1 : index
    %18 = vector.load %arg3[%c0_9, %c0_10, %c1] : memref<1x4x2xf32, #tpu.memory_space<vmem>>, vector<1x4x1xf32>
    %19 = vector.shape_cast %18 : vector<1x4x1xf32> to vector<4x1xf32>
    %20 = arith.mulf %19, %15 : vector<4x1xf32>
    %21 = arith.mulf %5, %20 : vector<4x1xf32>
    %22 = arith.subf %17, %21 : vector<4x1xf32>
    %23 = vector.broadcast %20 : vector<4x1xf32> to vector<4x256xf32>
    %24 = arith.mulf %1, %23 : vector<4x256xf32>
    %25 = vector.broadcast %22 : vector<4x1xf32> to vector<4x256xf32>
    %26 = arith.addf %24, %25 : vector<4x256xf32>
    %c0_11 = arith.constant 0 : index
    %c0_12 = arith.constant 0 : index
    %c0_13 = arith.constant 0 : index
    %27 = vector.load %arg4[%c0_11, %c0_12, %c0_13] : memref<1x4x256xf32, #tpu.memory_space<vmem>>, vector<1x4x256xf32>
    %28 = vector.shape_cast %27 : vector<1x4x256xf32> to vector<4x256xf32>
    %29 = vector.shape_cast %26 : vector<4x256xf32> to vector<1x4x256xf32>
    tpu.vector_store %arg4[%c0_11, %c0_12, %c0_13], %29 {strides = array<i32>} : memref<1x4x256xf32, #tpu.memory_space<vmem>>, vector<1x4x256xf32>,
    return
  }
  func.func @transform_0(%arg0: i32, %arg1: i32) -> (i32, i32, i32) {
    %c0_i32 = arith.constant 0 : i32
    %c0_i32_0 = arith.constant 0 : i32
    return %arg0, %arg1, %c0_i32 : i32, i32, i32
  }
  func.func @transform_1(%arg0: i32, %arg1: i32) -> (i32, i32, i32) {
    %c0_i32 = arith.constant 0 : i32
    %c0_i32_0 = arith.constant 0 : i32
    return %arg0, %arg1, %c0_i32 : i32, i32, i32
  }
  func.func @transform_2(%arg0: i32, %arg1: i32) -> (i32, i32, i32) {
    %c0_i32 = arith.constant 0 : i32
    %c0_i32_0 = arith.constant 0 : i32
    return %arg0, %arg1, %c0_i32 : i32, i32, i32
  }
}

</mosaic_0001>

<bundles_post_ra>
// kernel: tpu_custom_call.1
= control target key start
LH: loop header
LB: loop body
LE: loop exit
PB: predicated region body
PF: predicated region fallthrough
CT: control target
= control target key end

     0   :  { %7 = vsyncpa [#allocation3], 0  ;;  %s799_s0 = inlined_call_operand.hbm [shape: f32[2,4,256], index: 0, kind: input, shape index: {}]   ;;  %s800_s1 = inlined_call_operand.vmem [shape: f32[2,4,2], index: 1, kind: input, shape index: {}]   ;;  %s801_s2 = inlined_call_operand.hbm [shape: f32[2,4,256], index: 2, kind: output, shape index: {}]  }
   0x1   :  { %9 = vsyncpa [#allocation3 + $0x1], 0 }
   0x2   :  { %10 = vsyncpa [#allocation4], 0 }
   0x3   :  { %12 = vsyncpa [#allocation4 + $0x1], 0  ;;  %s614_s9 = smov 0   ;;  %s616_s10 = smov 0  }
   0x4   :  { %s618_s11 = smov 0   ;;  %s620_s12 = smov 0  }
   0x5   :  { %s622_s13 = smov 0   ;;  %s624_s14 = smov 0  }
   0x6 LB: > { %s390_s15 = sadd.s32 4294967295, %s591_s14   ;;  %s391_s16 = sadd.s32 4294967294, %s591_s14   ;;  %s591_s14 = sphi %s624_s14, %s18_s14   ;;  %s587_s13 = sphi %s622_s13, %s817_s13   ;;  %s583_s12 = sphi %s620_s12, %s816_s12   ;;  %s579_s11 = sphi %s618_s11, %s815_s11   ;;  %s575_s10 = sphi %s616_s10, %s814_s10   ;;  %s571_s9 = sphi %s614_s9, %s813_s9  }
   0x7   : > { %s30_s17 = sadd.s32 1, %s587_s13  ;;  %s39_s18 = sadd.s32 1, %s579_s11 }
   0x8   : > { %p32_p0 = scmp.ge.s32.totalorder %s30_s17, 2  ;;  %p46_p1 = scmp.ne.s32.totalorder %s579_s11, %s575_s10 }
   0x9   : > { %p47_p2 = scmp.eq.s32.totalorder %s591_s14, 0  ;;  %p52_p3 = scmp.ne.s32.totalorder %s575_s10, %s571_s9 }
   0xa   : > { %s819_s17 = smov (%p32_p0, %s30_s17), 0  ;;  %p53_p5 = scmp.eq.s32.totalorder %s390_s15, 0 }
   0xb   : > { %p655_p4 = por %p47_p2, %p46_p1  ;;  %s34_s20 = ssub.s32 %s587_s13, %s819_s17 }
   0xc   : > { %p106_p6 = scmp.eq.s32.totalorder %s390_s15, 1  ;;  %p37_p7 = scmp.eq.s32.totalorder %s34_s20, 0 }
   0xd   : > { %p661_p8 = por %p53_p5, %p52_p3  ;;  %p112_p10 = scmp.eq.s32.totalorder %s391_s16, 1 }
   0xe   : > { %p665_p9 = por %p106_p6, %p46_p1  ;;  %p420_p13 = scmp.lt.s32.totalorder %s591_s14, 2 }
   0xf   : > { %s670_s23 = scalar_select %p37_p7, %s579_s11, %s39_s18  }
  0x10   : > { %s805_s22 = scalar_select %p665_p9, 1, 0 }
  0x11   : > { %p672_p11 = por %p112_p10, %p52_p3  ;;  %s132_s25 = sand.u32 1, %s579_s11  }
  0x12   : > { %s394_s26 = sshll.u32 %s132_s25, 3  ;;  %s406_s27 = sshll.u32 %s587_s13, 7 }
  0x13   : > { %s806_s24 = scalar_select %p672_p11, 1, 0 }
  0x14   : > { %s683_s30 = scalar_lea.hbm %s799_s0, %s406_s27  ;;  %s136_s3 = scalar_lea.vmem [#allocation2], %s394_s26 }
  0x15   : > { %s146_s4 = sshll.u32 %s136_s3, 4  ;;  %p689_p0 = pnand %p420_p13, %p655_p4  ;;  %s685_s4 = int_to_ptr.vmem [resolvable:$true] %s146_s4 }
  0x16   : > { %s133_s6 = scalar_lea.sflag [#allocation3], %s132_s25  ;;  %s479_s7 = scalar_lea.hbm %s683_s30, 128 }
  0x17   : > { %p480_p3 = scmp.ne.s32.totalorder %s683_s30, %s479_s7  ;;  %p481_p5 = pneg %p689_p0 }
  0x18   : > { %s484_s16 = scalar_lea.hbm %s799_s0, 256  ;;  %p485_p4 = scmp.lt.u32.totalorder %s683_s30, %s799_s0 }
  0x19   : > { %p482_p6 = pnand %p481_p5, %p480_p3  ;;  %p486_p10 = scmp.lt.u32.totalorder %s484_s16, %s479_s7 }
  0x1a   : > { %p488_p12 = scmp.lt.u32.totalorder %s479_s7, %s683_s30 }
  0x1b   : > { %p483_p7 = pneg %p482_p6  ;;  %p487_p13 = por %p486_p10, %p485_p4 }
  0x1d   : > { %p489_p1 = por %p488_p12, %p487_p13 }
  0x1f   : > { %p490_p2 = pnand %p489_p1, %p483_p7 }
  0x21   : > { %493 = shalt.err (!%p490_p2)
}
  0x22   : > { %s494_s20 = scalar_lea.vmem %s685_s4, 128  ;;  %s593_s25 = smov [#allocation2]  }
  0x23   : > { %p495_p3 = scmp.ne.s32.totalorder %s685_s4, %s494_s20  ;;  %s499_s26 = sshll.u32 %s593_s25, 4  ;;  %s500_s26 = int_to_ptr.vmem [resolvable:$false] %s499_s26 }
  0x24   : > { %s501_s27 = scalar_lea.vmem %s500_s26, 256  ;;  %p502_p9 = scmp.lt.s32.totalorder %s685_s4, %s500_s26 }
  0x25   : > { %p497_p6 = pnand %p495_p3, %p481_p5  ;;  %p503_p4 = scmp.lt.s32.totalorder %s501_s27, %s494_s20 }
  0x27   : > { %p498_p11 = pneg %p497_p6  ;;  %p504_p10 = por %p503_p4, %p502_p9 }
  0x29   : > { %p505_p12 = pnand %p504_p10, %p498_p11 }
  0x2b   : > { %508 = shalt.err (!%p505_p12)
}
  0x2c   : > { %415 = dma.hbm_to_vmem [thread:$0]  (!%p689_p0), %s683_s30, 128, %s685_s4, %s133_s6  }
  0x2d   : > { %p808_p1 = scmp.lt.s32.totalorder %s591_s14, 3  ;;  %p809_p2 = scmp.ge.s32.totalorder %s591_s14, 1 }
  0x2f   : > { %p162_p5 = pnand %p809_p2, %p808_p1 }
  0x30   : > { %s725_s28 = sand.u32 (!%p162_p5), 1, %s575_s10  }
  0x31   : > { %165 = sbr.rel (%p162_p5) target bundleno = 642 (0x282), region = 28  ;;  %s398_s29 = sshll.u32 (!%p162_p5), %s725_s28, 3 }
  0x32   : > { %s168_s3 = scalar_lea.sflag (!%p162_p5), [#allocation3], %s725_s28  ;;  %s171_s5 = scalar_lea.vmem (!%p162_p5), [#allocation2], %s398_s29 }
  0x38   : > { %562 = dma.done.wait (%p661_p8), %s168_s3, 128  }
  0x39   : > { %564 = vsyncadd (%p661_p8), %s168_s3, 4294967168  ;;  %vm210_vm0 = vcmask 1043456   ;;  %v206_v0 = vld [vmem:[%s171_s5] sm:$0xff]  ;;  %v594_v5 = vmov 839922192   ;;  %v221_v7 = vlaneseq  ;;  %v595_v20 = vmov 1  }
  0x3a   : > { %v208_v1 = vcombine.high %v206_v0, %v206_v0  ;;  %v211_v2 = vsel %vm210_vm0, %v206_v0, 0.0  ;;  %v219_v6 = vunpack.c.l.s4 %v594_v5  ;;  %474 = vset.pattern.permute.xlu1 %v595_v20  ;;  %p199_p8 = scmp.lt.s32.totalorder %s583_s12, 1  ;;  %v596_v24 = vmov 0   ;;  %s597_s8 = smov 127  }
  0x3b   : > { %v222_v9 = vshrl.u32 %v221_v7, 7  ;;  %475 = vset.pattern.permute.xlu0 %v596_v24  ;;  %s407_s15 = sshll.u32 %s583_s12, 7  ;;  %s198_s16 = scalar_lea.vmem [#allocation5], %s398_s29 }
  0x3c   : > { %v212_v3 = vsel %vm210_vm0, %v208_v1, 0.0  ;;  %v220_v8 = vunpack.c.0.s8 %v219_v6  ;;  %s200_s21 = scalar_select %p199_p8, %s583_s12, 1 }
  0x3d   : > { %v213_v4 = vadd.f32 %v212_v3, %v211_v2  ;;  %s291_s18 = sshll.u32 %s198_s16, 4  ;;  %s750_s25 = scalar_lea.hbm %s801_s2, %s407_s15  ;;  %s752_s18 = int_to_ptr.vmem [resolvable:$true] %s291_s18 }
  0x3e   : > { %v223_v10 = vsub.s32 %v220_v8, %v222_v9  ;;  %s400_s30 = sshll.u32 %s200_s21, 2  ;;  %s275_s26 = scalar_lea.sflag [#allocation4], %s725_s28 }
  0x3f   : > { %214 = vadd.xlane.f32.xlu0 %v213_v4  ;;  %s205_s7 = scalar_lea.vmem %s800_s1, %s400_s30  ;;  %s509_s27 = scalar_lea.vmem %s752_s18, 128 }
  0x40   : > { %v239_v25 = vld [vmem:[%s205_s7] sm:$0xf]  ;;  %p510_p9 = scmp.ne.s32.totalorder %s752_s18, %s509_s27  ;;  %p810_p11 = scmp.ne.s32.totalorder %s805_s22, 0 }
  0x41   : > { %s598_s12 = smov [#allocation5]  }
  0x42   : > { %p511_p0 = pnand %p510_p9, %p810_p11  ;;  %s513_s29 = sshll.u32 %s598_s12, 4  ;;  %s514_s29 = int_to_ptr.vmem [resolvable:$false] %s513_s29 }
  0x43   : > { %s515_s3 = scalar_lea.vmem %s514_s29, 256  ;;  %p516_p13 = scmp.lt.s32.totalorder %s752_s18, %s514_s29 }
  0x44   : > { %p512_p7 = pneg %p511_p0  ;;  %p517_p3 = scmp.lt.s32.totalorder %s515_s3, %s509_s27 }
  0x46   : > { %p518_p6 = por %p517_p3, %p516_p13 }
  0x48   : > { %p519_p4 = pnand %p518_p6, %p512_p7 }
  0xcc   : > { %v215_v11 = vpop.xlane.xlu0 %214 }
  0xcd   : > { %v216_v12 = vmul.f32 0.00390625, %v215_v11 }
  0xcf   : > { %v224_v13 = vrot.slane %v216_v12, %v223_v10 }
  0xd1   : > { %v226_v14 = vsub.f32 %v206_v0, %v224_v13 }
  0xd3   : > { %v227_v15 = vmul.f32 %v226_v14, %v226_v14 }
  0xd5   : > { %v229_v16 = vcombine.high %v227_v15, %v227_v15  ;;  %v231_v17 = vsel %vm210_vm0, %v227_v15, 0.0 }
  0xd7   : > { %v232_v18 = vsel %vm210_vm0, %v229_v16, 0.0 }
  0xd8   : > { %v233_v19 = vadd.f32 %v232_v18, %v231_v17 }
  0xda   : > { %234 = vadd.xlane.f32.xlu0 %v233_v19 }
 0x167   : > { %v235_v21 = vpop.xlane.xlu0 %234 }
 0x168   : > { %v236_v22 = vmul.f32 0.00390625, %v235_v21 }
 0x16a   : > { %v237_v23 = vadd.f32 1e-05, %v236_v22 }
 0x16c   : > { %477 = vrsqrt.f32 %v237_v23 }
 0x176   : > { %v478_v26 = vpop.eup %477 }
 0x177   : > { %v240_v27 = vmul.f32 %v478_v26, %v239_v25 }
 0x179   : > { %v241_v28 = vmul.f32 %v240_v27, %v216_v12 }
 0x17b   : > { %243 = vrot.lane.b32.xlu1 %v241_v28, %s597_s8 }
 0x17f   : > { %249 = vperm.xlu1 %474, %v240_v27  }
 0x1ed   : > { %v244_v29 = vpop.permute.xlu1 %243 }
 0x1ee   : > { %v246_v30 = vsub.f32 %v239_v25, %v244_v29 }
 0x1f0   : > { %262 = vperm.xlu0 %475, %v246_v30  }
 0x1fe   : > { %v250_v31 = vpop.permute.xlu1 %249 }
 0x1ff   : > { %v257_v32 = vrot.slane %v250_v31, %v223_v10 }
 0x201   : > { %v259_v34 = vmul.f32 %v257_v32, %v206_v0 }
 0x26f   : > { %v263_v33 = vpop.permute.xlu0 %262 }
 0x270   : > { %v270_v35 = vrot.slane %v263_v33, %v223_v10 }
 0x272   : > { %v272_v36 = vadd.f32 %v270_v35, %v259_v34 }
 0x274   : > { %273 = vst [vmem:[%s198_s16] sm:$0xff] %v272_v36 }
 0x275   : > { %522 = shalt.err (!%p519_p4)
}
 0x276   : > { %s523_s28 = scalar_lea.hbm %s750_s25, 128  ;;  %s527_s30 = scalar_lea.hbm %s801_s2, 256 }
 0x277   : > { %p524_p10 = scmp.ne.s32.totalorder %s750_s25, %s523_s28  ;;  %p528_p2 = scmp.lt.u32.totalorder %s750_s25, %s801_s2 }
 0x278   : > { %p529_p5 = scmp.lt.u32.totalorder %s527_s30, %s523_s28  ;;  %p531_p9 = scmp.lt.u32.totalorder %s523_s28, %s750_s25 }
 0x279   : > { %p525_p12 = pnand %p524_p10, %p810_p11 }
 0x27a   : > { %p530_p8 = por %p529_p5, %p528_p2 }
 0x27b   : > { %p526_p1 = pneg %p525_p12 }
 0x27c   : > { %p532_p0 = por %p531_p9, %p530_p8 }
 0x27e   : > { %p533_p7 = pnand %p532_p0, %p526_p1 }
 0x280   : > { %536 = shalt.err (!%p533_p7)
}
 0x281   : > { %410 = dma.vmem_to_hbm [thread:$0]  (%p810_p11), %s752_s18, 128, %s750_s25, %s275_s26  }
 0x282 PF: > { %s303_s7 = sand.u32 1, %s571_s9   ;;  %p811_p13 = scmp.ne.s32.totalorder %s806_s24, 0 }
 0x283   : > { %p812_p3 = scmp.ge.s32.totalorder %s591_s14, 2  ;;  %s304_s8 = scalar_lea.sflag [#allocation4], %s303_s7 }
 0x285   : > { %p417_p6 = pnand %p812_p3, %p811_p13 }
 0x287   : > { %566 = dma.done.wait (!%p417_p6), %s304_s8, 128  }
 0x288   : > { %568 = vsyncadd (!%p417_p6), %s304_s8, 4294967168  ;;  %s18_s14 = sadd.s32 1, %s591_s14   ;;  %s813_s9 = smov %s575_s10 }
 0x289   : > { %p15_p4 = scmp.ge.s32.totalorder %s18_s14, 4   ;;  %s814_s10 = smov %s579_s11 }
 0x28a   : > { %s815_s11 = smov %s670_s23  ;;  %s816_s12 = smov %s587_s13 }
 0x28b   : > { %s817_s13 = smov %s819_s17  ;;  %17 = sbr.rel (!%p15_p4) target bundleno = 6 (0x6), region = 76 }
 0x292   :  { %309 = vsyncpa [#allocation3], 1 }
 0x293   :  { %311 = vsyncpa [#allocation3 + $0x1], 1 }
 0x294   :  { %312 = vsyncpa [#allocation4], 1 }
 0x295   :  { %314 = vsyncpa [#allocation4 + $0x1], 1 }

</bundles_post_ra>
